<compile_context>
chip_gen: v5e
topology: v5e:2x2
jax: 0.10.0
libtpu: 0.0.40
codegen_flags: <defaults>
</compile_context>

<pallas_src>
import functools
import math

import jax
import jax.numpy as jnp
from jax import lax
from jax.experimental import pallas as pl
from jax.experimental.pallas import tpu as pltpu


def _round_up(v, m):
    return (v + m - 1) // m * m


def _sublane(dtype):
    # 8 rows per vreg sublane group for 4-byte dtypes, 16 for 2-byte, 32 for 1-byte.
    return max(8, 32 // jnp.dtype(dtype).itemsize)


def _vmem_limit_bytes():
    try:
        cap = int(getattr(pltpu.get_tpu_info(), "vmem_capacity_bytes",
                          64 * 1024 * 1024))
    except Exception:
        cap = 64 * 1024 * 1024  # conservative fallback (v7x per-TC VMEM)
    # ~100 MiB on 128-MiB parts (v5e/v6e), ~52 MiB on 64-MiB parts (v7x).
    return min(100 * 1024 * 1024, int(cap * 0.82))


def _cls_head_kernel(x_ref, w_ref, b_ref, o_ref, acc_ref, *,
                     inv_n, seq_tile, true_n, mask_seq):
    # x_ref: (TB, TN, D), w_ref: (C_pad, D), b_ref: (1, C_pad)
    # o_ref: (TB, C_pad), acc_ref: (TB, D) f32 scratch
    n = pl.program_id(1)

    @pl.when(n == 0)
    def _():
        acc_ref[...] = jnp.zeros_like(acc_ref)

    x = x_ref[...].astype(jnp.float32)  # widen before the reduce (no-op for f32)
    if mask_seq:
        # Ragged last sequence tile: zero rows past the true sequence length.
        d = x.shape[-1]
        row = n * seq_tile + lax.broadcasted_iota(jnp.int32, (seq_tile, d), 0)
        x = jnp.where(row < true_n, x, 0.0)
    acc_ref[...] += jnp.sum(x, axis=1)

    @pl.when(n == pl.num_programs(1) - 1)
    def _():
        lhs = acc_ref[...]
        w = w_ref[...]
        if w.dtype != jnp.float32:
            # Cast the small (TB, D) side for a native low-precision MXU pass
            # instead of widening the whole weight tile on every final step.
            lhs = lhs.astype(w.dtype)
        # (TB, D) x (C, D) contracted on D -> (TB, C); weight stays in PyTorch
        # nn.Linear layout, so no wrapper-side transpose / extra HBM pass.
        logits = lax.dot_general(
            lhs, w,
            dimension_numbers=(((1,), (1,)), ((), ())),
            preferred_element_type=jnp.float32,
        )
        logits = logits * inv_n + b_ref[...].astype(jnp.float32)
        o_ref[...] = logits.astype(o_ref.dtype)


def classification_head(x, weight, bias, *, max_seq_tile=None):
    """x: (B, N, D); weight: (C, D) (PyTorch nn.Linear layout); bias: (C,)."""
    B, N, D = x.shape
    C = weight.shape[0]

    x_item = jnp.dtype(x.dtype).itemsize
    w_item = jnp.dtype(weight.dtype).itemsize
    out_dtype = x.dtype
    out_item = jnp.dtype(out_dtype).itemsize

    # Pad only the tiny weight / bias (lane-dense output, MXU-friendly C).
    # x itself is never padded or copied.
    C_pad = _round_up(C, 128)
    w_p = weight if C_pad == C else jnp.pad(weight, ((0, C_pad - C), (0, 0)))
    b_1d = bias if C_pad == C else jnp.pad(bias, (0, C_pad - C))
    b_p = b_1d.reshape(1, C_pad)

    sub = _sublane(x.dtype)

    # ---------------- VMEM budget (explicit, per generation) ----------------
    vmem_limit = _vmem_limit_bytes()
    # Weight/bias residency (assume double-buffered worst case so the budget
    # also covers the non-Buffered fallback) + headroom for sems / internals.
    fixed = 2 * C_pad * D * w_item + 2 * C_pad * jnp.dtype(bias.dtype).itemsize
    headroom = 2 * 1024 * 1024
    avail = max(vmem_limit - fixed - headroom, 2 * 1024 * 1024)

    def _per_tile_bytes(tb, tn):
        # double-buffered x tile + f32 accumulator + double-buffered out block
        return 2 * tb * tn * D * x_item + tb * D * 4 + 2 * tb * C_pad * out_item

    # Batch tile: aim for >= 2 tiles (v7x megacore), sublane-rounded, <= 128.
    TB = min(128, max(sub, _round_up(-(-B // 2), sub)))
    if TB > B:
        TB = B  # a single full-extent batch block is legal

    min_tn = N if N < sub else sub
    # Joint TB/TN derivation: shrink TB first if even the minimal sequence
    # tile blows the budget (huge model_dim), instead of silently overshooting.
    while TB > sub and TB % sub == 0 and _per_tile_bytes(TB, min_tn) > avail:
        TB = max(sub, (TB // 2) // sub * sub)

    # Sequence tile: as big as the budget allows (fewer, bigger grid steps).
    if _per_tile_bytes(TB, N) <= avail:
        TN = N
    else:
        tn = (avail - TB * D * 4 - 2 * TB * C_pad * out_item) // (2 * TB * D * x_item)
        tn = max(min_tn, (tn // sub) * sub)
        TN = int(min(tn, (N // sub) * sub)) if N >= sub else N
    if max_seq_tile is not None and N >= sub:   # testing knob (ragged path)
        TN = max(min_tn, min(TN, (max_seq_tile // sub) * sub))

    grid = (pl.cdiv(B, TB), pl.cdiv(N, TN))
    mask_seq = (N % TN) != 0

    kernel = functools.partial(
        _cls_head_kernel, inv_n=1.0 / N, seq_tile=TN, true_n=N, mask_seq=mask_seq)

    def _build(single_buffer_params):
        # Weight / bias have constant index maps -> never re-fetched; request a
        # single VMEM buffer so a second one doesn't eat into the x tile.
        pk = {"pipeline_mode": pl.Buffered(1)} if single_buffer_params else {}
        return pl.pallas_call(
            kernel,
            out_shape=jax.ShapeDtypeStruct((B, C_pad), out_dtype),
            grid_spec=pltpu.PrefetchScalarGridSpec(
                num_scalar_prefetch=0,
                grid=grid,
                in_specs=[
                    # streamed activation tiles (full D, no padded copy of x)
                    pl.BlockSpec((TB, TN, D), lambda b, n: (b, n, 0)),
                    # resident weight / bias
                    pl.BlockSpec((C_pad, D), lambda b, n: (0, 0), **pk),
                    pl.BlockSpec((1, C_pad), lambda b, n: (0, 0), **pk),
                ],
                out_specs=pl.BlockSpec((TB, C_pad), lambda b, n: (b, 0)),
                scratch_shapes=[pltpu.VMEM((TB, D), jnp.float32)],
            ),
            compiler_params=pltpu.CompilerParams(
                # batch tiles shard across TensorCores (v7x megacore);
                # sequence axis is the resident-accumulator reduction axis.
                dimension_semantics=("parallel", "arbitrary"),
                vmem_limit_bytes=vmem_limit,
            ),
        )

    try:
        out = _build(True)(x, w_p, b_p)
    except Exception:
        # Fallback if this jax build rejects pipeline_mode / Buffered(1) here.
        out = _build(False)(x, w_p, b_p)

    return out[:, :C]


if __name__ == "__main__":
    def _init(key, batch, n, model_dim, num_classes, dtype=jnp.float32):
        kx, kw, kb = jax.random.split(key, 3)
        x = jax.random.normal(kx, (batch, n, model_dim), dtype=dtype)
        # Deterministic nn.Linear-style init: U(-1/sqrt(D), 1/sqrt(D))
        bound = 1.0 / math.sqrt(model_dim)
        w = jax.random.uniform(kw, (num_classes, model_dim),
                               minval=-bound, maxval=bound, dtype=dtype)
        b = jax.random.uniform(kb, (num_classes,),
                               minval=-bound, maxval=bound, dtype=dtype)
        return x, w, b

    # 1) Small config consistent with the module: (batch, n, model_dim).
    x, w, b = _init(jax.random.PRNGKey(0), batch=2, n=8, model_dim=32,
                    num_classes=10)
    out = jax.block_until_ready(classification_head(x, w, b))
    ref = x.mean(axis=1) @ w.T + b
    assert out.shape == (2, 10)
    assert jnp.allclose(out, ref, atol=1e-5, rtol=1e-5)

    # 2) Ragged batch tile + ragged (forced-tiled) masked sequence path.
    x2, w2, b2 = _init(jax.random.PRNGKey(1), batch=11, n=13, model_dim=48,
                       num_classes=7)
    out2 = jax.block_until_ready(classification_head(x2, w2, b2, max_seq_tile=8))
    ref2 = x2.mean(axis=1) @ w2.T + b2
    assert out2.shape == (11, 7)
    assert jnp.allclose(out2, ref2, atol=1e-4, rtol=1e-4)

    print("KERNEL_OK")
</pallas_src>

<mosaic_0001>
module attributes {stable_mosaic.version = 11 : i64} {
  func.func @_cls_head_kernel(%arg0: i32, %arg1: i32, %arg2: memref<2x8x32xf32, #tpu.memory_space<vmem>>, %arg3: memref<128x32xf32, #tpu.memory_space<vmem>>, %arg4: memref<1x128xf32, #tpu.memory_space<vmem>>, %arg5: memref<2x128xf32, #tpu.memory_space<vmem>>, %arg6: memref<2x32xf32, #tpu.memory_space<vmem>>) attributes {dimension_semantics = [#tpu.dimension_semantics<parallel>, #tpu.dimension_semantics<arbitrary>], iteration_bounds = array<i64: 1, 1>, scalar_prefetch = 0 : i64, scratch_operands = 1 : i64, tpu.core_type = #tpu.core_type<tc>, window_params = [{transform_indices = @transform_0, window_bounds = array<i64: 2, 8, 32>}, {pipeline_mode = #tpu.pipeline_mode<synchronous>, transform_indices = @transform_1, window_bounds = array<i64: 128, 32>}, {pipeline_mode = #tpu.pipeline_mode<synchronous>, transform_indices = @transform_2, window_bounds = array<i64: 1, 128>}, {transform_indices = @transform_3, window_bounds = array<i64: 2, 128>}]} {
    %c0_i32 = arith.constant 0 : i32
    %0 = arith.cmpi eq, %arg1, %c0_i32 : i32
    %1 = arith.extui %0 : i1 to i32
    %c0_i32_0 = arith.constant 0 : i32
    %2 = arith.cmpi ne, %1, %c0_i32_0 : i32
    scf.if %2 {
      %cst_9 = arith.constant 0.000000e+00 : f32
      %11 = vector.broadcast %cst_9 : f32 to vector<2x32xf32>
      %c0_10 = arith.constant 0 : index
      %c0_11 = arith.constant 0 : index
      %12 = vector.load %arg6[%c0_10, %c0_11] : memref<2x32xf32, #tpu.memory_space<vmem>>, vector<2x32xf32>
      tpu.vector_store %arg6[%c0_10, %c0_11], %11 {strides = array<i32>} : memref<2x32xf32, #tpu.memory_space<vmem>>, vector<2x32xf32>,
    } else {
    }
    %c0 = arith.constant 0 : index
    %c0_1 = arith.constant 0 : index
    %c0_2 = arith.constant 0 : index
    %3 = vector.load %arg2[%c0, %c0_1, %c0_2] : memref<2x8x32xf32, #tpu.memory_space<vmem>>, vector<2x8x32xf32>
    %c0_3 = arith.constant 0 : index
    %c0_4 = arith.constant 0 : index
    %4 = vector.load %arg6[%c0_3, %c0_4] : memref<2x32xf32, #tpu.memory_space<vmem>>, vector<2x32xf32>
    %cst = arith.constant dense<0.000000e+00> : vector<2x32xf32>
    %5 = vector.multi_reduction <add>, %3, %cst [1] : vector<2x8x32xf32> to vector<2x32xf32>
    %6 = arith.addf %4, %5 : vector<2x32xf32>
    %c0_5 = arith.constant 0 : index
    %c0_6 = arith.constant 0 : index
    %7 = vector.load %arg6[%c0_5, %c0_6] : memref<2x32xf32, #tpu.memory_space<vmem>>, vector<2x32xf32>
    tpu.vector_store %arg6[%c0_5, %c0_6], %6 {strides = array<i32>} : memref<2x32xf32, #tpu.memory_space<vmem>>, vector<2x32xf32>,
    %c0_i32_7 = arith.constant 0 : i32
    %8 = arith.cmpi eq, %arg1, %c0_i32_7 : i32
    %9 = arith.extui %8 : i1 to i32
    %c0_i32_8 = arith.constant 0 : i32
    %10 = arith.cmpi ne, %9, %c0_i32_8 : i32
    scf.if %10 {
      %c0_9 = arith.constant 0 : index
      %c0_10 = arith.constant 0 : index
      %11 = vector.load %arg6[%c0_9, %c0_10] : memref<2x32xf32, #tpu.memory_space<vmem>>, vector<2x32xf32>
      %c0_11 = arith.constant 0 : index
      %c0_12 = arith.constant 0 : index
      %12 = vector.load %arg3[%c0_11, %c0_12] : memref<128x32xf32, #tpu.memory_space<vmem>>, vector<128x32xf32>
      %cst_13 = arith.constant dense<0.000000e+00> : vector<2x128xf32>
      %13 = tpu.matmul %11, %12, %cst_13 {dimension_numbers = #tpu.dot_dimension_numbers<[1], [1], [0], [0], [0, 0, 1, 0], [], []>} : vector<2x32xf32>, vector<128x32xf32>, vector<2x128xf32> -> vector<2x128xf32>
      %cst_14 = arith.constant 1.250000e-01 : f32
      %14 = vector.broadcast %cst_14 : f32 to vector<2x128xf32>
      %15 = arith.mulf %13, %14 : vector<2x128xf32>
      %c0_15 = arith.constant 0 : index
      %c0_16 = arith.constant 0 : index
      %16 = vector.load %arg4[%c0_15, %c0_16] : memref<1x128xf32, #tpu.memory_space<vmem>>, vector<1x128xf32>
      %17 = vector.broadcast %16 : vector<1x128xf32> to vector<2x128xf32>
      %18 = arith.addf %15, %17 : vector<2x128xf32>
      %c0_17 = arith.constant 0 : index
      %c0_18 = arith.constant 0 : index
      %19 = vector.load %arg5[%c0_17, %c0_18] : memref<2x128xf32, #tpu.memory_space<vmem>>, vector<2x128xf32>
      tpu.vector_store %arg5[%c0_17, %c0_18], %18 {strides = array<i32>} : memref<2x128xf32, #tpu.memory_space<vmem>>, vector<2x128xf32>,
    } else {
    }
    return
  }
  func.func @transform_0(%arg0: i32, %arg1: i32) -> (i32, i32, i32) {
    %c0_i32 = arith.constant 0 : i32
    %c0_i32_0 = arith.constant 0 : i32
    return %arg0, %arg1, %c0_i32 : i32, i32, i32
  }
  func.func @transform_1(%arg0: i32, %arg1: i32) -> (i32, i32) {
    %c0_i32 = arith.constant 0 : i32
    %c0_i32_0 = arith.constant 0 : i32
    %c0_i32_1 = arith.constant 0 : i32
    return %c0_i32, %c0_i32_0 : i32, i32
  }
  func.func @transform_2(%arg0: i32, %arg1: i32) -> (i32, i32) {
    %c0_i32 = arith.constant 0 : i32
    %c0_i32_0 = arith.constant 0 : i32
    %c0_i32_1 = arith.constant 0 : i32
    return %c0_i32, %c0_i32_0 : i32, i32
  }
  func.func @transform_3(%arg0: i32, %arg1: i32) -> (i32, i32) {
    %c0_i32 = arith.constant 0 : i32
    %c0_i32_0 = arith.constant 0 : i32
    return %arg0, %c0_i32 : i32, i32
  }
}

module attributes {stable_mosaic.version = 11 : i64} {
  func.func @_cls_head_kernel(%arg0: i32, %arg1: i32, %arg2: memref<2x8x32xf32, #tpu.memory_space<vmem>>, %arg3: memref<128x32xf32, #tpu.memory_space<vmem>>, %arg4: memref<1x128xf32, #tpu.memory_space<vmem>>, %arg5: memref<2x128xf32, #tpu.memory_space<vmem>>, %arg6: memref<2x32xf32, #tpu.memory_space<vmem>>) attributes {dimension_semantics = [#tpu.dimension_semantics<parallel>, #tpu.dimension_semantics<arbitrary>], iteration_bounds = array<i64: 1, 1>, scalar_prefetch = 0 : i64, scratch_operands = 1 : i64, tpu.core_type = #tpu.core_type<tc>, window_params = [{transform_indices = @transform_0, window_bounds = array<i64: 2, 8, 32>}, {pipeline_mode = #tpu.pipeline_mode<synchronous>, transform_indices = @transform_1, window_bounds = array<i64: 128, 32>}, {pipeline_mode = #tpu.pipeline_mode<synchronous>, transform_indices = @transform_2, window_bounds = array<i64: 1, 128>}, {transform_indices = @transform_3, window_bounds = array<i64: 2, 128>}]} {
    %c0_i32 = arith.constant 0 : i32
    %0 = arith.cmpi eq, %arg1, %c0_i32 : i32
    %1 = arith.extui %0 : i1 to i32
    %c0_i32_0 = arith.constant 0 : i32
    %2 = arith.cmpi ne, %1, %c0_i32_0 : i32
    scf.if %2 {
      %cst_9 = arith.constant 0.000000e+00 : f32
      %11 = vector.broadcast %cst_9 : f32 to vector<2x32xf32>
      %c0_10 = arith.constant 0 : index
      %c0_11 = arith.constant 0 : index
      %12 = vector.load %arg6[%c0_10, %c0_11] : memref<2x32xf32, #tpu.memory_space<vmem>>, vector<2x32xf32>
      tpu.vector_store %arg6[%c0_10, %c0_11], %11 {strides = array<i32>} : memref<2x32xf32, #tpu.memory_space<vmem>>, vector<2x32xf32>,
    } else {
    }
    %c0 = arith.constant 0 : index
    %c0_1 = arith.constant 0 : index
    %c0_2 = arith.constant 0 : index
    %3 = vector.load %arg2[%c0, %c0_1, %c0_2] : memref<2x8x32xf32, #tpu.memory_space<vmem>>, vector<2x8x32xf32>
    %c0_3 = arith.constant 0 : index
    %c0_4 = arith.constant 0 : index
    %4 = vector.load %arg6[%c0_3, %c0_4] : memref<2x32xf32, #tpu.memory_space<vmem>>, vector<2x32xf32>
    %cst = arith.constant dense<0.000000e+00> : vector<2x32xf32>
    %5 = vector.multi_reduction <add>, %3, %cst [1] : vector<2x8x32xf32> to vector<2x32xf32>
    %6 = arith.addf %4, %5 : vector<2x32xf32>
    %c0_5 = arith.constant 0 : index
    %c0_6 = arith.constant 0 : index
    %7 = vector.load %arg6[%c0_5, %c0_6] : memref<2x32xf32, #tpu.memory_space<vmem>>, vector<2x32xf32>
    tpu.vector_store %arg6[%c0_5, %c0_6], %6 {strides = array<i32>} : memref<2x32xf32, #tpu.memory_space<vmem>>, vector<2x32xf32>,
    %c0_i32_7 = arith.constant 0 : i32
    %8 = arith.cmpi eq, %arg1, %c0_i32_7 : i32
    %9 = arith.extui %8 : i1 to i32
    %c0_i32_8 = arith.constant 0 : i32
    %10 = arith.cmpi ne, %9, %c0_i32_8 : i32
    scf.if %10 {
      %c0_9 = arith.constant 0 : index
      %c0_10 = arith.constant 0 : index
      %11 = vector.load %arg6[%c0_9, %c0_10] : memref<2x32xf32, #tpu.memory_space<vmem>>, vector<2x32xf32>
      %c0_11 = arith.constant 0 : index
      %c0_12 = arith.constant 0 : index
      %12 = vector.load %arg3[%c0_11, %c0_12] : memref<128x32xf32, #tpu.memory_space<vmem>>, vector<128x32xf32>
      %cst_13 = arith.constant dense<0.000000e+00> : vector<2x128xf32>
      %13 = tpu.matmul %11, %12, %cst_13 {dimension_numbers = #tpu.dot_dimension_numbers<[1], [1], [0], [0], [0, 0, 1, 0], [], []>} : vector<2x32xf32>, vector<128x32xf32>, vector<2x128xf32> -> vector<2x128xf32>
      %cst_14 = arith.constant 1.250000e-01 : f32
      %14 = vector.broadcast %cst_14 : f32 to vector<2x128xf32>
      %15 = arith.mulf %13, %14 : vector<2x128xf32>
      %c0_15 = arith.constant 0 : index
      %c0_16 = arith.constant 0 : index
      %16 = vector.load %arg4[%c0_15, %c0_16] : memref<1x128xf32, #tpu.memory_space<vmem>>, vector<1x128xf32>
      %17 = vector.broadcast %16 : vector<1x128xf32> to vector<2x128xf32>
      %18 = arith.addf %15, %17 : vector<2x128xf32>
      %c0_17 = arith.constant 0 : index
      %c0_18 = arith.constant 0 : index
      %19 = vector.load %arg5[%c0_17, %c0_18] : memref<2x128xf32, #tpu.memory_space<vmem>>, vector<2x128xf32>
      tpu.vector_store %arg5[%c0_17, %c0_18], %18 {strides = array<i32>} : memref<2x128xf32, #tpu.memory_space<vmem>>, vector<2x128xf32>,
    } else {
    }
    return
  }
  func.func @transform_0(%arg0: i32, %arg1: i32) -> (i32, i32, i32) {
    %c0_i32 = arith.constant 0 : i32
    %c0_i32_0 = arith.constant 0 : i32
    return %arg0, %arg1, %c0_i32 : i32, i32, i32
  }
  func.func @transform_1(%arg0: i32, %arg1: i32) -> (i32, i32) {
    %c0_i32 = arith.constant 0 : i32
    %c0_i32_0 = arith.constant 0 : i32
    %c0_i32_1 = arith.constant 0 : i32
    return %c0_i32, %c0_i32_0 : i32, i32
  }
  func.func @transform_2(%arg0: i32, %arg1: i32) -> (i32, i32) {
    %c0_i32 = arith.constant 0 : i32
    %c0_i32_0 = arith.constant 0 : i32
    %c0_i32_1 = arith.constant 0 : i32
    return %c0_i32, %c0_i32_0 : i32, i32
  }
  func.func @transform_3(%arg0: i32, %arg1: i32) -> (i32, i32) {
    %c0_i32 = arith.constant 0 : i32
    %c0_i32_0 = arith.constant 0 : i32
    return %arg0, %c0_i32 : i32, i32
  }
}

</mosaic_0001>

<bundles_post_ra>
// kernel: tpu_custom_call.1
= control target key start
LH: loop header
LB: loop body
LE: loop exit
PB: predicated region body
PF: predicated region fallthrough
CT: control target
= control target key end

     0   :  { %vm24_vm0 = vcmask 261120   ;;  %s310_s0 = inlined_call_operand.vmem [shape: f32[2,8,32], index: 0, kind: input, shape index: {}]   ;;  %s311_s1 = inlined_call_operand.vmem [shape: f32[128,32], index: 1, kind: input, shape index: {}]   ;;  %s312_s2 = inlined_call_operand.vmem [shape: f32[1,128], index: 2, kind: input, shape index: {}]   ;;  %s313_s3 = inlined_call_operand.hbm [shape: f32[2,128], index: 3, kind: output, shape index: {}]  }
   0x1   :  { %v66_v0 = vld [vmem:[%s311_s1 + $0x78] sm:$0xff]  ;;  %v65_v1 = vld [vmem:[%s311_s1 + $0x70] sm:$0xff] }
   0x2   :  { %161 = vmatpush.xpose.msk.msra.mxu0 %vm24_vm0, %v66_v0 }
   0x3   :  { %8 = vsyncpa [#allocation4], 0  ;;  %v64_v2 = vld [vmem:[%s311_s1 + $0x68] sm:$0xff]  ;;  %v21_v3 = vld [vmem:[%s310_s0] sm:$0xff]  ;;  %vm19_vm1 = vcmask 254976   ;;  %v207_v15 = vmov 0.0  }
   0x4   :  { %v22_v4 = vld [vmem:[%s310_s0 + $0x8] sm:$0xff]  ;;  %v25_v5 = vsel %vm24_vm0, %v21_v3, 0.0  ;;  %v63_v9 = vld [vmem:[%s311_s1 + $0x60] sm:$0xff]  ;;  %v62_v14 = vld [vmem:[%s311_s1 + $0x58] sm:$0xff]  ;;  %20 = vst.msk [vmem:[#allocation2] sm:$0x3] %vm19_vm1, %v207_v15 }
   0x5   :  { %v32_v6 = vsel %vm24_vm0, %v22_v4, 0.0  ;;  %v26_v7 = vrot.slane %v25_v5, 4  ;;  %v61_v20 = vld [vmem:[%s311_s1 + $0x50] sm:$0xff]  ;;  %vm41_vm2 = vcmask 1041409   ;;  %v60_v25 = vld [vmem:[%s311_s1 + $0x48] sm:$0xff]  ;;  %v59_v27 = vld [vmem:[%s311_s1 + $0x40] sm:$0xff] }
   0x6   :  { %162 = vmatpush.xpose.msk.msra.mxu0 %vm24_vm0, %v65_v1  ;;  %v33_v8 = vrot.slane %v32_v6, 4  ;;  %v58_v28 = vld [vmem:[%s311_s1 + $0x38] sm:$0xff]  ;;  %v57_v29 = vld [vmem:[%s311_s1 + $0x30] sm:$0xff]  ;;  %v56_v30 = vld [vmem:[%s311_s1 + $0x28] sm:$0xff]  ;;  %s208_s22 = smov [#allocation3]   ;;  %s152_s25 = sshll.u32 %s313_s3, 4  ;;  %s153_s25 = int_to_ptr.hbm [resolvable:$true] %s152_s25 }
   0x7   :  { %v27_v10 = vadd.f32 %v26_v7, %v25_v5  ;;  %v55_v31 = vld [vmem:[%s311_s1 + $0x20] sm:$0xff]  ;;  %v54_v32 = vld [vmem:[%s311_s1 + $0x18] sm:$0xff]  ;;  %v53_v33 = vld [vmem:[%s311_s1 + $0x10] sm:$0xff]  ;;  %s150_s23 = sshll.u32 %s208_s22, 4  ;;  %s151_s23 = int_to_ptr.vmem [resolvable:$true] %s150_s23 }
   0x8   :  { %v34_v11 = vadd.f32 %v33_v8, %v32_v6  ;;  %v52_v34 = vld [vmem:[%s311_s1 + $0x8] sm:$0xff]  ;;  %v51_v35 = vld [vmem:[%s311_s1] sm:$0xff] }
   0x9   :  { %v28_v12 = vrot.slane %v27_v10, 2  ;;  %v180_v37 = vld [vmem:[%s312_s2] ss:$0 sm:$0xff] }
   0xa   :  { %163 = vmatpush.xpose.msk.msra.mxu0 %vm24_vm0, %v64_v2  ;;  %v35_v13 = vrot.slane %v34_v11, 2 }
   0xb   :  { %v29_v16 = vadd.f32 %v28_v12, %v27_v10  ;;  %v23_v23 = vld [vmem:[#allocation2] sm:$0x3] }
   0xc   :  { %v36_v17 = vadd.f32 %v35_v13, %v34_v11 }
   0xd   :  { %v30_v18 = vrot.slane %v29_v16, 1 }
   0xe   :  { %164 = vmatpush.xpose.msk.msra.mxu0 %vm24_vm0, %v63_v9  ;;  %v37_v19 = vrot.slane %v36_v17, 1 }
   0xf   :  { %v31_v21 = vadd.f32 %v30_v18, %v29_v16 }
  0x10   :  { %v38_v22 = vadd.f32 %v37_v19, %v36_v17 }
  0x12   :  { %165 = vmatpush.xpose.msk.msra.mxu0 %vm24_vm0, %v62_v14  ;;  %v42_v24 = vsel %vm41_vm2, %v38_v22, %v31_v21 }
  0x13   :  { %v44_v26 = vadd.f32 %v42_v24, %v23_v23 }
  0x15   :  { %46 = vst.msk [vmem:[#allocation2] sm:$0x3] %vm19_vm1, %v44_v26 }
  0x16   :  { %166 = vmatpush.xpose.msk.msra.mxu0 %vm24_vm0, %v61_v20 }
  0x1a   :  { %167 = vmatpush.xpose.msk.msra.mxu0 %vm24_vm0, %v60_v25 }
  0x1c   :  { %v50_v36 = vld [vmem:[#allocation2] sm:$0x3] }
  0x1e   :  { %168 = vmatpush.xpose.msk.msra.mxu0 %vm24_vm0, %v59_v27 }
  0x22   :  { %169 = vmatpush.xpose.msk.msra.mxu0 %vm24_vm0, %v58_v28 }
  0x26   :  { %170 = vmatpush.xpose.msk.msra.mxu0 %vm24_vm0, %v57_v29 }
  0x2a   :  { %171 = vmatpush.xpose.msk.msra.mxu0 %vm24_vm0, %v56_v30 }
  0x2e   :  { %172 = vmatpush.xpose.msk.msra.mxu0 %vm24_vm0, %v55_v31 }
  0x32   :  { %173 = vmatpush.xpose.msk.msra.mxu0 %vm24_vm0, %v54_v32 }
  0x36   :  { %174 = vmatpush.xpose.msk.msra.mxu0 %vm24_vm0, %v53_v33 }
  0x3a   :  { %175 = vmatpush.xpose.msk.msra.mxu0 %vm24_vm0, %v52_v34 }
  0x3e   :  { %176 = vmatpush.xpose.msk.msra.mxu0 %vm24_vm0, %v51_v35 }
  0x41   :  { %177 = vmatmul.msk.f32.vlgmr.msra.gmra.mxu0 %vm24_vm0, %v50_v36 }
  0xbe   :  { %v135_v38 = vpop.f32.mrf.mxu0 }
  0xbf   :  { %v138_v39 = vmul.f32 0.125, %v135_v38 }
  0xc1   :  { %v143_v40 = vadd.f32 %v180_v37, %v138_v39 }
  0xc3   :  { %144 = vst [vmem:[#allocation3] sm:$0x3] %v143_v40 }
  0xc4   :  { %155 = dma.vmem_to_hbm [thread:$0]  %s151_s23, 32, %s153_s25, [#allocation4]  }
  0xc5   :  { %205 = dma.done.wait [#allocation4], 32  }
  0xc6   :  { %206 = vsyncadd [#allocation4], 4294967264 }
  0xc7   :  { %160 = vsyncpa [#allocation4], 1 }

// kernel: tpu_custom_call.1
= control target key start
LH: loop header
LB: loop body
LE: loop exit
PB: predicated region body
PF: predicated region fallthrough
CT: control target
= control target key end

     0   :  { %vm24_vm0 = vcmask 261120   ;;  %s310_s0 = inlined_call_operand.vmem [shape: f32[2,8,32], index: 0, kind: input, shape index: {}]   ;;  %s311_s1 = inlined_call_operand.vmem [shape: f32[128,32], index: 1, kind: input, shape index: {}]   ;;  %s312_s2 = inlined_call_operand.vmem [shape: f32[1,128], index: 2, kind: input, shape index: {}]   ;;  %s313_s3 = inlined_call_operand.hbm [shape: f32[2,128], index: 3, kind: output, shape index: {}]  }
   0x1   :  { %v66_v0 = vld [vmem:[%s311_s1 + $0x78] sm:$0xff]  ;;  %v65_v1 = vld [vmem:[%s311_s1 + $0x70] sm:$0xff] }
   0x2   :  { %161 = vmatpush.xpose.msk.msra.mxu0 %vm24_vm0, %v66_v0 }
   0x3   :  { %8 = vsyncpa [#allocation4], 0  ;;  %v64_v2 = vld [vmem:[%s311_s1 + $0x68] sm:$0xff]  ;;  %v21_v3 = vld [vmem:[%s310_s0] sm:$0xff]  ;;  %vm19_vm1 = vcmask 254976   ;;  %v207_v15 = vmov 0.0  }
   0x4   :  { %v22_v4 = vld [vmem:[%s310_s0 + $0x8] sm:$0xff]  ;;  %v25_v5 = vsel %vm24_vm0, %v21_v3, 0.0  ;;  %v63_v9 = vld [vmem:[%s311_s1 + $0x60] sm:$0xff]  ;;  %v62_v14 = vld [vmem:[%s311_s1 + $0x58] sm:$0xff]  ;;  %20 = vst.msk [vmem:[#allocation2] sm:$0x3] %vm19_vm1, %v207_v15 }
   0x5   :  { %v32_v6 = vsel %vm24_vm0, %v22_v4, 0.0  ;;  %v26_v7 = vrot.slane %v25_v5, 4  ;;  %v61_v20 = vld [vmem:[%s311_s1 + $0x50] sm:$0xff]  ;;  %vm41_vm2 = vcmask 1041409   ;;  %v60_v25 = vld [vmem:[%s311_s1 + $0x48] sm:$0xff]  ;;  %v59_v27 = vld [vmem:[%s311_s1 + $0x40] sm:$0xff] }
   0x6   :  { %162 = vmatpush.xpose.msk.msra.mxu0 %vm24_vm0, %v65_v1  ;;  %v33_v8 = vrot.slane %v32_v6, 4  ;;  %v58_v28 = vld [vmem:[%s311_s1 + $0x38] sm:$0xff]  ;;  %v57_v29 = vld [vmem:[%s311_s1 + $0x30] sm:$0xff]  ;;  %v56_v30 = vld [vmem:[%s311_s1 + $0x28] sm:$0xff]  ;;  %s208_s22 = smov [#allocation3]   ;;  %s152_s25 = sshll.u32 %s313_s3, 4  ;;  %s153_s25 = int_to_ptr.hbm [resolvable:$true] %s152_s25 }
   0x7   :  { %v27_v10 = vadd.f32 %v26_v7, %v25_v5  ;;  %v55_v31 = vld [vmem:[%s311_s1 + $0x20] sm:$0xff]  ;;  %v54_v32 = vld [vmem:[%s311_s1 + $0x18] sm:$0xff]  ;;  %v53_v33 = vld [vmem:[%s311_s1 + $0x10] sm:$0xff]  ;;  %s150_s23 = sshll.u32 %s208_s22, 4  ;;  %s151_s23 = int_to_ptr.vmem [resolvable:$true] %s150_s23 }
   0x8   :  { %v34_v11 = vadd.f32 %v33_v8, %v32_v6  ;;  %v52_v34 = vld [vmem:[%s311_s1 + $0x8] sm:$0xff]  ;;  %v51_v35 = vld [vmem:[%s311_s1] sm:$0xff] }
   0x9   :  { %v28_v12 = vrot.slane %v27_v10, 2  ;;  %v180_v37 = vld [vmem:[%s312_s2] ss:$0 sm:$0xff] }
   0xa   :  { %163 = vmatpush.xpose.msk.msra.mxu0 %vm24_vm0, %v64_v2  ;;  %v35_v13 = vrot.slane %v34_v11, 2 }
   0xb   :  { %v29_v16 = vadd.f32 %v28_v12, %v27_v10  ;;  %v23_v23 = vld [vmem:[#allocation2] sm:$0x3] }
   0xc   :  { %v36_v17 = vadd.f32 %v35_v13, %v34_v11 }
   0xd   :  { %v30_v18 = vrot.slane %v29_v16, 1 }
   0xe   :  { %164 = vmatpush.xpose.msk.msra.mxu0 %vm24_vm0, %v63_v9  ;;  %v37_v19 = vrot.slane %v36_v17, 1 }
   0xf   :  { %v31_v21 = vadd.f32 %v30_v18, %v29_v16 }
  0x10   :  { %v38_v22 = vadd.f32 %v37_v19, %v36_v17 }
  0x12   :  { %165 = vmatpush.xpose.msk.msra.mxu0 %vm24_vm0, %v62_v14  ;;  %v42_v24 = vsel %vm41_vm2, %v38_v22, %v31_v21 }
  0x13   :  { %v44_v26 = vadd.f32 %v42_v24, %v23_v23 }
  0x15   :  { %46 = vst.msk [vmem:[#allocation2] sm:$0x3] %vm19_vm1, %v44_v26 }
  0x16   :  { %166 = vmatpush.xpose.msk.msra.mxu0 %vm24_vm0, %v61_v20 }
  0x1a   :  { %167 = vmatpush.xpose.msk.msra.mxu0 %vm24_vm0, %v60_v25 }
  0x1c   :  { %v50_v36 = vld [vmem:[#allocation2] sm:$0x3] }
  0x1e   :  { %168 = vmatpush.xpose.msk.msra.mxu0 %vm24_vm0, %v59_v27 }
  0x22   :  { %169 = vmatpush.xpose.msk.msra.mxu0 %vm24_vm0, %v58_v28 }
  0x26   :  { %170 = vmatpush.xpose.msk.msra.mxu0 %vm24_vm0, %v57_v29 }
  0x2a   :  { %171 = vmatpush.xpose.msk.msra.mxu0 %vm24_vm0, %v56_v30 }
  0x2e   :  { %172 = vmatpush.xpose.msk.msra.mxu0 %vm24_vm0, %v55_v31 }
  0x32   :  { %173 = vmatpush.xpose.msk.msra.mxu0 %vm24_vm0, %v54_v32 }
  0x36   :  { %174 = vmatpush.xpose.msk.msra.mxu0 %vm24_vm0, %v53_v33 }
  0x3a   :  { %175 = vmatpush.xpose.msk.msra.mxu0 %vm24_vm0, %v52_v34 }
  0x3e   :  { %176 = vmatpush.xpose.msk.msra.mxu0 %vm24_vm0, %v51_v35 }
  0x41   :  { %177 = vmatmul.msk.f32.vlgmr.msra.gmra.mxu0 %vm24_vm0, %v50_v36 }
  0xbe   :  { %v135_v38 = vpop.f32.mrf.mxu0 }
  0xbf   :  { %v138_v39 = vmul.f32 0.125, %v135_v38 }
  0xc1   :  { %v143_v40 = vadd.f32 %v180_v37, %v138_v39 }
  0xc3   :  { %144 = vst [vmem:[#allocation3] sm:$0x3] %v143_v40 }
  0xc4   :  { %155 = dma.vmem_to_hbm [thread:$0]  %s151_s23, 32, %s153_s25, [#allocation4]  }
  0xc5   :  { %205 = dma.done.wait [#allocation4], 32  }
  0xc6   :  { %206 = vsyncadd [#allocation4], 4294967264 }
  0xc7   :  { %160 = vsyncpa [#allocation4], 1 }

</bundles_post_ra>
